<compile_context>
chip_gen: v7x
topology: tpu7x:2x2x1
jax: 0.10.0
libtpu: 0.0.40
codegen_flags: <defaults>
</compile_context>

<pallas_src>
import jax
import jax.numpy as jnp
from jax.experimental import pallas as pl
from jax.experimental.pallas import tpu as pltpu

LANE = 128     # TPU vreg lane width (last axis)
SUBLANE = 8    # TPU vreg sublane count (second-to-last axis)


def _round_up(x, m):
    return ((x + m - 1) // m) * m


def actor_mu_kernel(xt_ref, w1t_ref, b1_ref, w2t_ref, b2_ref, w3t_ref, b3_ref,
                    mut_ref):
    """One batch tile (batch on lanes) of the mu_net MLP, feature-major."""
    xt = xt_ref[...]                                               # (obs, TB)

    # Layer 1: Linear + Tanh   -> (H, TB), all 128 lanes live
    h1 = jnp.dot(w1t_ref[...], xt, preferred_element_type=jnp.float32)
    h1 = jnp.tanh(h1 + b1_ref[...])

    # Layer 2: Linear + Tanh   -> (H, TB)
    h2 = jnp.dot(w2t_ref[...], h1, preferred_element_type=jnp.float32)
    h2 = jnp.tanh(h2 + b2_ref[...])

    # Output layer: Linear (identity) -> mu^T, lane-dense unmasked store
    mu = jnp.dot(w3t_ref[...], h2, preferred_element_type=jnp.float32)
    mut_ref[...] = (mu + b3_ref[...]).astype(mut_ref.dtype)        # (A, TB)


def _mlp_reference(observation, params):
    w1, b1, w2, b2, w3, b3, _ = params
    h = jnp.tanh(observation @ w1 + b1)
    h = jnp.tanh(h @ w2 + b2)
    return h @ w3 + b3


def actor_forward(observation, params, *, batch_tile=2048,
                  small_batch_threshold=256, io_dtype=jnp.float32):
    """Returns (mu, sigma) == (policy.loc, policy.scale broadcast to mu.shape)."""
    w1, b1, w2, b2, w3, b3, log_std = params
    batch, obs_dim = observation.shape
    hidden = w1.shape[1]
    act_dim = w3.shape[1]

    sigma_row = jnp.exp(log_std).reshape(1, act_dim)

    # --- Small-batch fast path: fused XLA beats kernel launch + padding. ---
    if batch < small_batch_threshold:
        mu = _mlp_reference(observation, params)
        return mu, jnp.broadcast_to(sigma_row, mu.shape)

    # --- Feature-major parameters (transposed once; tiny arrays). ---
    w1t = w1.T.astype(io_dtype)                       # (H, obs)
    w2t = w2.T.astype(io_dtype)                       # (H, H)
    w3t = w3.T.astype(io_dtype)                       # (A, H)
    b1t = b1.reshape(hidden, 1).astype(io_dtype)      # (H, 1)
    b2t = b2.reshape(hidden, 1).astype(io_dtype)      # (H, 1)
    b3t = b3.reshape(act_dim, 1).astype(io_dtype)     # (A, 1)

    # --- Batch-on-lanes tiling: TB lanes per grid step (multiple of 128). ---
    tb = min(batch_tile, _round_up(batch, LANE))
    if batch > LANE:
        # v7x: guarantee >= 2 grid steps so "parallel" can shard over both TCs.
        tb = min(tb, _round_up(-(-batch // 2), LANE))
    tb = _round_up(tb, LANE)
    batch_pad = _round_up(batch, tb)

    obs_t = observation.astype(io_dtype).T            # (obs, batch)
    if batch_pad != batch:
        obs_t = jnp.pad(obs_t, ((0, 0), (0, batch_pad - batch)))
    grid = (batch_pad // tb,)

    def resident(a):
        # Constant block index -> weights/biases stay VMEM-resident across
        # all batch-grid iterations (no re-DMA).
        ndim = a.ndim
        return pl.BlockSpec(a.shape, lambda i: (0,) * ndim)

    mu_t = pl.pallas_call(
        actor_mu_kernel,
        out_shape=jax.ShapeDtypeStruct((act_dim, batch_pad), io_dtype),
        grid=grid,
        in_specs=[
            pl.BlockSpec((obs_dim, tb), lambda i: (0, i)),   # observation tile
            resident(w1t), resident(b1t),
            resident(w2t), resident(b2t),
            resident(w3t), resident(b3t),
        ],
        out_specs=pl.BlockSpec((act_dim, tb), lambda i: (0, i)),
        compiler_params=pltpu.CompilerParams(
            dimension_semantics=("parallel",)),              # split batch over TCs
    )(obs_t, w1t, b1t, w2t, b2t, w3t, b3t)

    mu = mu_t[:, :batch].T.astype(jnp.float32)               # (batch, A)
    sigma = jnp.broadcast_to(sigma_row, mu.shape)
    return mu, sigma


def init_params(network_sizes, key):
    """Deterministic synthetic init for the MLP (Linear weights as (in, out))
    and the log_std parameter (-0.05 * ones, as in Actor.__init__)."""
    params = []
    keys = jax.random.split(key, len(network_sizes) - 1)
    for k, (fan_in, fan_out) in zip(keys, zip(network_sizes[:-1],
                                              network_sizes[1:])):
        bound = 1.0 / jnp.sqrt(fan_in)
        w = jax.random.uniform(k, (fan_in, fan_out), jnp.float32,
                               minval=-bound, maxval=bound)
        b = jnp.zeros((1, fan_out), jnp.float32)
        params.extend([w, b])
    log_std = -0.05 * jnp.ones((1, network_sizes[-1]), jnp.float32)
    params.append(log_std)
    return tuple(params)


def reference_forward(observation, params):
    mu = _mlp_reference(observation, params)
    sigma = jnp.broadcast_to(jnp.exp(params[-1]), mu.shape)
    return mu, sigma


if __name__ == "__main__":
    # network_sizes = [obs_dim, hidden, hidden, act_dim]
    network_sizes = [16, 32, 32, 8]
    batch = 2

    key = jax.random.PRNGKey(0)
    k_obs, k_params = jax.random.split(key)
    observation = jax.random.normal(k_obs, (batch, network_sizes[0]),
                                    jnp.float32)
    params = init_params(network_sizes, k_params)

    # Force the Pallas kernel path even at this tiny batch (threshold=0) so the
    # kernel itself is exercised and verified.
    mu, sigma = jax.block_until_ready(
        actor_forward(observation, params, small_batch_threshold=0))

    mu_ref, sigma_ref = reference_forward(observation, params)
    assert mu.shape == mu_ref.shape and sigma.shape == sigma_ref.shape
    assert jnp.allclose(mu, mu_ref, atol=1e-5, rtol=1e-5)
    assert jnp.allclose(sigma, sigma_ref, atol=1e-6, rtol=1e-6)

    # Small-batch fast path (default threshold) must agree as well.
    mu_fast, sigma_fast = jax.block_until_ready(actor_forward(observation, params))
    assert jnp.allclose(mu_fast, mu_ref, atol=1e-5, rtol=1e-5)
    assert jnp.allclose(sigma_fast, sigma_ref, atol=1e-6, rtol=1e-6)

    # TODO(synk): policy.rsample()/log_prob (get_action) are sampling ops on the
    # returned distribution, not part of forward(); not implemented in-kernel.
    print("KERNEL_OK")
</pallas_src>

<mosaic_0001>
module attributes {stable_mosaic.version = 11 : i64} {
  func.func @actor_mu_kernel(%arg0: i32, %arg1: memref<16x128xf32, #tpu.memory_space<vmem>>, %arg2: memref<32x16xf32, #tpu.memory_space<vmem>>, %arg3: memref<32x1xf32, #tpu.memory_space<vmem>>, %arg4: memref<32x32xf32, #tpu.memory_space<vmem>>, %arg5: memref<32x1xf32, #tpu.memory_space<vmem>>, %arg6: memref<8x32xf32, #tpu.memory_space<vmem>>, %arg7: memref<8x1xf32, #tpu.memory_space<vmem>>, %arg8: memref<8x128xf32, #tpu.memory_space<vmem>>) attributes {dimension_semantics = [#tpu.dimension_semantics<parallel>], iteration_bounds = array<i64: 1>, scalar_prefetch = 0 : i64, scratch_operands = 0 : i64, tpu.core_type = #tpu.core_type<tc>, window_params = [{transform_indices = @transform_0, window_bounds = array<i64: 16, 128>}, {pipeline_mode = #tpu.pipeline_mode<synchronous>, transform_indices = @transform_1, window_bounds = array<i64: 32, 16>}, {pipeline_mode = #tpu.pipeline_mode<synchronous>, transform_indices = @transform_2, window_bounds = array<i64: 32, 1>}, {pipeline_mode = #tpu.pipeline_mode<synchronous>, transform_indices = @transform_3, window_bounds = array<i64: 32, 32>}, {pipeline_mode = #tpu.pipeline_mode<synchronous>, transform_indices = @transform_4, window_bounds = array<i64: 32, 1>}, {pipeline_mode = #tpu.pipeline_mode<synchronous>, transform_indices = @transform_5, window_bounds = array<i64: 8, 32>}, {pipeline_mode = #tpu.pipeline_mode<synchronous>, transform_indices = @transform_6, window_bounds = array<i64: 8, 1>}, {transform_indices = @transform_7, window_bounds = array<i64: 8, 128>}]} {
    %c0 = arith.constant 0 : index
    %c0_0 = arith.constant 0 : index
    %0 = vector.load %arg1[%c0, %c0_0] : memref<16x128xf32, #tpu.memory_space<vmem>>, vector<16x128xf32>
    %c0_1 = arith.constant 0 : index
    %c0_2 = arith.constant 0 : index
    %1 = vector.load %arg2[%c0_1, %c0_2] : memref<32x16xf32, #tpu.memory_space<vmem>>, vector<32x16xf32>
    %cst = arith.constant dense<0.000000e+00> : vector<32x128xf32>
    %2 = tpu.matmul %1, %0, %cst {dimension_numbers = #tpu.dot_dimension_numbers<[1], [0], [0], [1], [0, 0, 1, 1], [], []>} : vector<32x16xf32>, vector<16x128xf32>, vector<32x128xf32> -> vector<32x128xf32>
    %c0_3 = arith.constant 0 : index
    %c0_4 = arith.constant 0 : index
    %3 = vector.load %arg3[%c0_3, %c0_4] : memref<32x1xf32, #tpu.memory_space<vmem>>, vector<32x1xf32>
    %4 = vector.broadcast %3 : vector<32x1xf32> to vector<32x128xf32>
    %5 = arith.addf %2, %4 : vector<32x128xf32>
    %6 = math.tanh %5 : vector<32x128xf32>
    %c0_5 = arith.constant 0 : index
    %c0_6 = arith.constant 0 : index
    %7 = vector.load %arg4[%c0_5, %c0_6] : memref<32x32xf32, #tpu.memory_space<vmem>>, vector<32x32xf32>
    %cst_7 = arith.constant dense<0.000000e+00> : vector<32x128xf32>
    %8 = tpu.matmul %7, %6, %cst_7 {dimension_numbers = #tpu.dot_dimension_numbers<[1], [0], [0], [1], [0, 0, 1, 1], [], []>} : vector<32x32xf32>, vector<32x128xf32>, vector<32x128xf32> -> vector<32x128xf32>
    %c0_8 = arith.constant 0 : index
    %c0_9 = arith.constant 0 : index
    %9 = vector.load %arg5[%c0_8, %c0_9] : memref<32x1xf32, #tpu.memory_space<vmem>>, vector<32x1xf32>
    %10 = vector.broadcast %9 : vector<32x1xf32> to vector<32x128xf32>
    %11 = arith.addf %8, %10 : vector<32x128xf32>
    %12 = math.tanh %11 : vector<32x128xf32>
    %c0_10 = arith.constant 0 : index
    %c0_11 = arith.constant 0 : index
    %13 = vector.load %arg6[%c0_10, %c0_11] : memref<8x32xf32, #tpu.memory_space<vmem>>, vector<8x32xf32>
    %cst_12 = arith.constant dense<0.000000e+00> : vector<8x128xf32>
    %14 = tpu.matmul %13, %12, %cst_12 {dimension_numbers = #tpu.dot_dimension_numbers<[1], [0], [0], [1], [0, 0, 1, 1], [], []>} : vector<8x32xf32>, vector<32x128xf32>, vector<8x128xf32> -> vector<8x128xf32>
    %c0_13 = arith.constant 0 : index
    %c0_14 = arith.constant 0 : index
    %15 = vector.load %arg7[%c0_13, %c0_14] : memref<8x1xf32, #tpu.memory_space<vmem>>, vector<8x1xf32>
    %16 = vector.broadcast %15 : vector<8x1xf32> to vector<8x128xf32>
    %17 = arith.addf %14, %16 : vector<8x128xf32>
    %c0_15 = arith.constant 0 : index
    %c0_16 = arith.constant 0 : index
    %18 = vector.load %arg8[%c0_15, %c0_16] : memref<8x128xf32, #tpu.memory_space<vmem>>, vector<8x128xf32>
    tpu.vector_store %arg8[%c0_15, %c0_16], %17 {strides = array<i32>} : memref<8x128xf32, #tpu.memory_space<vmem>>, vector<8x128xf32>,
    return
  }
  func.func @transform_0(%arg0: i32) -> (i32, i32) {
    %c0_i32 = arith.constant 0 : i32
    %c0_i32_0 = arith.constant 0 : i32
    return %c0_i32, %arg0 : i32, i32
  }
  func.func @transform_1(%arg0: i32) -> (i32, i32) {
    %c0_i32 = arith.constant 0 : i32
    %c0_i32_0 = arith.constant 0 : i32
    %c0_i32_1 = arith.constant 0 : i32
    return %c0_i32, %c0_i32_0 : i32, i32
  }
  func.func @transform_2(%arg0: i32) -> (i32, i32) {
    %c0_i32 = arith.constant 0 : i32
    %c0_i32_0 = arith.constant 0 : i32
    %c0_i32_1 = arith.constant 0 : i32
    return %c0_i32, %c0_i32_0 : i32, i32
  }
  func.func @transform_3(%arg0: i32) -> (i32, i32) {
    %c0_i32 = arith.constant 0 : i32
    %c0_i32_0 = arith.constant 0 : i32
    %c0_i32_1 = arith.constant 0 : i32
    return %c0_i32, %c0_i32_0 : i32, i32
  }
  func.func @transform_4(%arg0: i32) -> (i32, i32) {
    %c0_i32 = arith.constant 0 : i32
    %c0_i32_0 = arith.constant 0 : i32
    %c0_i32_1 = arith.constant 0 : i32
    return %c0_i32, %c0_i32_0 : i32, i32
  }
  func.func @transform_5(%arg0: i32) -> (i32, i32) {
    %c0_i32 = arith.constant 0 : i32
    %c0_i32_0 = arith.constant 0 : i32
    %c0_i32_1 = arith.constant 0 : i32
    return %c0_i32, %c0_i32_0 : i32, i32
  }
  func.func @transform_6(%arg0: i32) -> (i32, i32) {
    %c0_i32 = arith.constant 0 : i32
    %c0_i32_0 = arith.constant 0 : i32
    %c0_i32_1 = arith.constant 0 : i32
    return %c0_i32, %c0_i32_0 : i32, i32
  }
  func.func @transform_7(%arg0: i32) -> (i32, i32) {
    %c0_i32 = arith.constant 0 : i32
    %c0_i32_0 = arith.constant 0 : i32
    return %c0_i32, %arg0 : i32, i32
  }
}

</mosaic_0001>

<bundles_post_ra>
// kernel: tpu_custom_call.1
= control target key start
LH: loop header
LB: loop body
LE: loop exit
PB: predicated region body
PF: predicated region fallthrough
CT: control target
= control target key end

     0   :  { %vm57_vm0 = vcmask 130048   ;;  %v512_v4 = vmov 0   ;;  %s638_s0 = inlined_call_operand.vmem [shape: f32[16,128], index: 0, kind: input, shape index: {}]   ;;  %s639_s1 = inlined_call_operand.vmem [shape: f32[32,16], index: 1, kind: input, shape index: {}]   ;;  %s640_s2 = inlined_call_operand.vmem [shape: f32[32,1], index: 2, kind: input, shape index: {}]   ;;  %s641_s3 = inlined_call_operand.vmem [shape: f32[32,32], index: 3, kind: input, shape index: {}]   ;;  %s642_s4 = inlined_call_operand.vmem [shape: f32[32,1], index: 4, kind: input, shape index: {}]   ;;  %s643_s5 = inlined_call_operand.vmem [shape: f32[8,32], index: 5, kind: input, shape index: {}]   ;;  %s644_s6 = inlined_call_operand.vmem [shape: f32[8,1], index: 6, kind: input, shape index: {}]   ;;  %s645_s7 = inlined_call_operand.hbm [shape: f32[8,128], index: 7, kind: output, shape index: {}]  }
   0x1   :  { %v27_v0 = vld [vmem:[%s638_s0] sm:$0xff]  ;;  %v28_v1 = vld [vmem:[%s638_s0 + $0x8] sm:$0xff]  ;;  %470 = vset.pattern.permute.xlu0 %v512_v4  ;;  %471 = vset.pattern.permute.xlu1 %v512_v4  ;;  %v35_v6 = vld [vmem:[%s640_s2 + $0x10] sm:$0xff] }
   0x2   :  { %v29_v2 = vld [vmem:[%s639_s1] sm:$0xff]  ;;  %v447_v3 = vpack.c.bf16 %v28_v1, %v27_v0  ;;  %v30_v7 = vld [vmem:[%s639_s1 + $0x8] sm:$0xff]  ;;  %49 = vperm.xlu1 %471, %v35_v6   ;;  %v31_v9 = vld [vmem:[%s639_s1 + $0x10] sm:$0xff] }
   0x3   :  { %416 = vmatprep.mubr.msk.f32.mxu0 %vm57_vm0, %v29_v2  ;;  %v33_v5 = vld [vmem:[%s640_s2] sm:$0xff]  ;;  %v34_v8 = vld [vmem:[%s640_s2 + $0x8] sm:$0xff]  ;;  %v36_v10 = vld [vmem:[%s640_s2 + $0x18] sm:$0xff] }
   0x4   :  { %448 = vmatprep.subr.bf16.mxu0 %v447_v3  ;;  %39 = vperm.xlu0 %470, %v33_v5  }
   0x5   :  { %450 = vmatpush3.bf16.msra.mxu0 %v447_v3 }
   0x6   :  { %12 = vsyncpa [#allocation3], 0  ;;  %v32_v11 = vld [vmem:[%s639_s1 + $0x18] sm:$0xff]  ;;  %v163_v12 = vld [vmem:[%s642_s4] sm:$0xff]  ;;  %54 = vperm.xlu1 %471, %v36_v10   ;;  %vm187_vm1 = vcmask 261120   ;;  %v513_v39 = vmov 0.0|0.0  }
   0x7   :  { %v164_v13 = vld [vmem:[%s642_s4 + $0x8] sm:$0xff]  ;;  %v165_v14 = vld [vmem:[%s642_s4 + $0x10] sm:$0xff]  ;;  %v166_v15 = vld [vmem:[%s642_s4 + $0x18] sm:$0xff]  ;;  %459 = vmatprep.subr.bf16.mxu0 %v513_v39  ;;  %vm514_vm2 = vmmov 0   ;;  %v515_v40 = vmov 0.0   ;;  %s516_s11 = smov [#allocation2]  }
   0x8   :  { %417 = vmatmul.mubr.msk.f32.vlgmr.msra.gmra.mrb[0].mxu0 %vm57_vm0, %v30_v7  ;;  %44 = vperm.xlu0 %470, %v34_v8   ;;  %v290_v16 = vld [vmem:[%s644_s6] sm:$0xff]  ;;  %v160_v36 = vld [vmem:[%s641_s3 + $0x8] sm:$0xff]  ;;  %v161_v37 = vld [vmem:[%s641_s3 + $0x10] sm:$0xff]  ;;  %s376_s12 = sshll.u32 %s516_s11, 4  ;;  %s377_s12 = int_to_ptr.vmem [resolvable:$true] %s376_s12 }
   0x9   :  { %419 = vmatprep.mubr.msk.f32.mxu0 %vm57_vm0, %v31_v9  ;;  %v159_v17 = vld [vmem:[%s641_s3] sm:$0xff]  ;;  %v162_v38 = vld [vmem:[%s641_s3 + $0x18] sm:$0xff]  ;;  %s488_s13 = scalar_lea.vmem %s377_s12, 128  ;;  %p493_p1 = scmp.lt.s32.totalorder %s377_s12, %s377_s12 }
   0xa   :  { %174 = vperm.xlu1 %471, %v164_v13   ;;  %430 = vmatprep.mubr.msk.f32.mxu1 %vm187_vm1, %v159_v17  ;;  %v289_v59 = vld [vmem:[%s643_s5] sm:$0xff]  ;;  %p489_p0 = scmp.ne.s32.totalorder %s377_s12, %s488_s13  ;;  %p494_p2 = scmp.lt.s32.totalorder %s488_s13, %s488_s13 }
   0xc   :  { %420 = vmatmul.mubr.msk.f32.gmra.mrb[2].mxu0 %vm57_vm0, %v32_v11  ;;  %169 = vperm.xlu0 %470, %v163_v12   ;;  %p495_p3 = por %p494_p2, %p493_p1 }
   0xd   :  { %444 = vmatprep.mubr.msk.f32.mxu0 %vm514_vm2, %v515_v40 }
   0xe   :  { %184 = vperm.xlu1 %471, %v166_v15   ;;  %p496_p4 = pnand %p495_p3, %p489_p0 }
  0x10   :  { %179 = vperm.xlu0 %470, %v165_v14  }
  0x14   :  { %293 = vperm.xlu0 %470, %v290_v16  }
  0x81   :  { %v50_v19 = vpop.permute.xlu1 %49 }
  0x83   :  { %v40_v18 = vpop.permute.xlu0 %39 }
  0x85   :  { %v55_v25 = vpop.permute.xlu1 %54 }
  0x87   :  { %v45_v20 = vpop.permute.xlu0 %44 }
  0x89   :  { %v175_v41 = vpop.permute.xlu1 %174 }
  0x8b   :  { %v170_v42 = vpop.permute.xlu0 %169 }
  0x8d   :  { %v185_v47 = vpop.permute.xlu1 %184 }
  0x8f   :  { %v180_v49 = vpop.permute.xlu0 %179 }
  0x93   :  { %v294_v60 = vpop.permute.xlu0 %293 }
  0xdb   :  { %v418_v21 = vpop.f32.mrb[0].mxu0 }
  0xdc   :  { %v142_v22 = vadd.f32 %v418_v21, %v45_v20  ;;  %v136_v23 = vpop.f32.mrb[1].mxu0 }
  0xdd   :  { %v137_v24 = vadd.f32 %v136_v23, %v40_v18 }
  0xde   :  { %472 = vtanh.f32 %v142_v22 }
  0xdf   :  { %474 = vtanh.f32 %v137_v24  ;;  %v421_v26 = vpop.f32.mrb[2].mxu0 }
  0xe0   :  { %v152_v27 = vadd.f32 %v421_v26, %v55_v25  ;;  %v146_v28 = vpop.f32.mrb[3].mxu0 }
  0xe1   :  { %v147_v29 = vadd.f32 %v146_v28, %v50_v19 }
  0xe2   :  { %476 = vtanh.f32 %v152_v27 }
  0xe3   :  { %478 = vtanh.f32 %v147_v29 }
  0xe8   :  { %v473_v30 = vpop.eup %472 }
  0xe9   :  { %v475_v31 = vpop.eup %474 }
  0xea   :  { %v451_v32 = vpack.c.bf16 %v473_v30, %v475_v31 }
  0xec   :  { %v477_v33 = vpop.eup %476  ;;  %452 = vmatprep.subr.bf16.mxu1 %v451_v32 }
  0xed   :  { %v479_v34 = vpop.eup %478  ;;  %454 = vmatpush3.bf16.msra.mxu1 %v451_v32 }
  0xee   :  { %v455_v35 = vpack.c.bf16 %v477_v33, %v479_v34 }
  0xf0   :  { %456 = vmatprep.subr.bf16.mxu1 %v455_v35 }
  0xf1   :  { %458 = vmatpush3.bf16.msra.mxu1 %v455_v35 }
  0xf4   :  { %431 = vmatmul.mubr.msk.f32.vlgmr.msra.gmra.mrb[0].mxu1 %vm187_vm1, %v160_v36 }
  0xf5   :  { %433 = vmatprep.mubr.msk.f32.mxu1 %vm187_vm1, %v161_v37 }
  0xf8   :  { %434 = vmatmul.mubr.msk.f32.gmra.mrb[2].mxu1 %vm187_vm1, %v162_v38 }
 0x1c7   :  { %v432_v43 = vpop.f32.mrb[0].mxu1 }
 0x1c8   :  { %v272_v44 = vadd.f32 %v432_v43, %v175_v41  ;;  %v266_v45 = vpop.f32.mrb[1].mxu1 }
 0x1c9   :  { %v267_v46 = vadd.f32 %v266_v45, %v170_v42 }
 0x1ca   :  { %480 = vtanh.f32 %v272_v44 }
 0x1cb   :  { %482 = vtanh.f32 %v267_v46  ;;  %v435_v48 = vpop.f32.mrb[2].mxu1 }
 0x1cc   :  { %v282_v50 = vadd.f32 %v435_v48, %v185_v47  ;;  %v276_v51 = vpop.f32.mrb[3].mxu1 }
 0x1cd   :  { %v277_v52 = vadd.f32 %v276_v51, %v180_v49 }
 0x1ce   :  { %484 = vtanh.f32 %v282_v50 }
 0x1cf   :  { %486 = vtanh.f32 %v277_v52 }
 0x1d4   :  { %v481_v53 = vpop.eup %480 }
 0x1d5   :  { %v483_v54 = vpop.eup %482 }
 0x1d6   :  { %v460_v55 = vpack.c.bf16 %v481_v53, %v483_v54 }
 0x1d8   :  { %v485_v56 = vpop.eup %484  ;;  %461 = vmatpush3.bf16.msra.mxu0 %v460_v55 }
 0x1d9   :  { %v487_v57 = vpop.eup %486  ;;  %462 = vmatprep.subr.bf16.mxu0 %v513_v39 }
 0x1da   :  { %v463_v58 = vpack.c.bf16 %v485_v56, %v487_v57 }
 0x1dc   :  { %464 = vmatpush3.bf16.msra.mxu0 %v463_v58 }
 0x1df   :  { %445 = vmatmul.mubr.msk.f32.vlgmr.msra.gmra.mrb[4].mxu0 %vm187_vm1, %v289_v59 }
 0x2b2   :  { %v365_v61 = vpop.f32.mrb[4].mxu0 }
 0x2b3   :  { %v366_v62 = vadd.f32 %v365_v61, %v294_v60  ;;  %v446_v63 = vpop.f32.mrb[5].mxu0 }
 0x2b5   :  { %369 = vst [vmem:[#allocation2] sm:$0xff] %v366_v62 }
 0x2b6   :  { %499 = shalt.err (!%p496_p4)
}
 0x2b7   :  { %s500_s5 = scalar_lea.hbm %s645_s7, 128 }
 0x2b8   :  { %p501_p5 = scmp.ne.s32.totalorder %s645_s7, %s500_s5  ;;  %p504_p6 = scmp.lt.u32.totalorder %s500_s5, %s645_s7 }
 0x2ba   :  { %p506_p7 = pnand %p504_p6, %p501_p5 }
 0x2bc   :  { %509 = shalt.err (!%p506_p7)
}
 0x2bd   :  { %379 = dma.vmem_to_hbm [thread:$0]  %s377_s12, 128, %s645_s7, [#allocation3]  }
 0x2be   :  { %510 = dma.done.wait [#allocation3], 128  }
 0x2bf   :  { %511 = vsyncadd [#allocation3], 4294967168 }
 0x2c0   :  { %383 = vsyncpa [#allocation3], 1 }

</bundles_post_ra>
